<compile_context>
chip_gen: v7x
topology: tpu7x:2x2x1
jax: 0.10.0
libtpu: 0.0.40
codegen_flags: <defaults>
</compile_context>

<pallas_src>
import jax
import jax.numpy as jnp
from jax.experimental import pallas as pl
from jax.experimental.pallas import tpu as pltpu

D_IN, D_H1, D_H2, D_OUT = 512, 128, 32, 2


def _round_up(a: int, b: int) -> int:
    return ((a + b - 1) // b) * b


def season_embedder_kernel(x_ref, w1_ref, b1_ref, w2_ref, b2_ref,
                           w3_ref, b3_ref, delta_ref, o_ref):
    x = x_ref[...]                                                  # (tb, 512)

    # MLP hot path on the MXU, f32 accumulation.
    h1 = jnp.dot(x, w1_ref[...], preferred_element_type=jnp.float32)
    h1 = jnp.maximum(h1 + b1_ref[...], 0.0)                         # (tb, 128)

    h2 = jnp.dot(h1, w2_ref[...], preferred_element_type=jnp.float32)
    h2 = jnp.maximum(h2 + b2_ref[...], 0.0)                         # (tb, 32)

    w = jnp.dot(h2, w3_ref[...], preferred_element_type=jnp.float32)
    w = w + b3_ref[...]                                             # (tb, 2)

    # ||w||_2 over the last (2-wide) dim: explicit lane-slice sum (VPU adds,
    # no XLU reduce) + rsqrt on the EUP (no sqrt + divide).
    w0 = w[:, 0:1]
    w1c = w[:, 1:2]
    sumsq = w0 * w0 + w1c * w1c                                     # (tb, 1)
    delta = delta_ref[0]                                            # SMEM scalar
    scale = 1.0 + delta * jax.lax.rsqrt(sumsq)                      # (tb, 1)
    o_ref[...] = (w * scale).astype(o_ref.dtype)


def season_embedder(x, w1, b1, w2, b2, w3, b3, delta, *, tb=512):
    """x: (B, 512) f32; weights (in, out); biases (1, out); delta: (1,) f32."""
    B = x.shape[0]
    # Effective batch tile: multiple of 8 (sublane), clamped to the batch.
    tb_eff = min(_round_up(tb, 8), _round_up(B, 8))
    B_pad = _round_up(B, tb_eff)
    if B_pad != B:
        x = jnp.pad(x, ((0, B_pad - B), (0, 0)))

    full = lambda i: (0, 0)
    out = pl.pallas_call(
        season_embedder_kernel,
        out_shape=jax.ShapeDtypeStruct((B_pad, D_OUT), jnp.float32),
        grid_spec=pltpu.PrefetchScalarGridSpec(
            num_scalar_prefetch=0,
            grid=(B_pad // tb_eff,),
            in_specs=[
                pl.BlockSpec((tb_eff, D_IN), lambda i: (i, 0)),     # x tile
                pl.BlockSpec((D_IN, D_H1), full),                   # W1 (resident)
                pl.BlockSpec((1, D_H1), full),                      # b1
                pl.BlockSpec((D_H1, D_H2), full),                   # W2
                pl.BlockSpec((1, D_H2), full),                      # b2
                pl.BlockSpec((D_H2, D_OUT), full),                  # W3
                pl.BlockSpec((1, D_OUT), full),                     # b3
                pl.BlockSpec(memory_space=pltpu.MemorySpace.SMEM),  # delta scalar
            ],
            out_specs=pl.BlockSpec((tb_eff, D_OUT), lambda i: (i, 0)),
        ),
        compiler_params=pltpu.CompilerParams(
            dimension_semantics=("parallel",)),
    )(x, w1, b1, w2, b2, w3, b3, delta)
    return out[:B] if B_pad != B else out


def reference(x, w1, b1, w2, b2, w3, b3, delta):
    h1 = jnp.maximum(x @ w1 + b1, 0.0)
    h2 = jnp.maximum(h1 @ w2 + b2, 0.0)
    w = h2 @ w3 + b3
    norm = jnp.sqrt(jnp.sum(w * w, axis=-1, keepdims=True))
    return w * (1.0 + delta[0] / norm)


if __name__ == "__main__":
    key = jax.random.PRNGKey(0)
    keys = jax.random.split(key, 8)

    # Small test shapes: B deliberately not a multiple of the tile so the
    # padding path and a multi-step (parallel) grid both get exercised.
    B = 100
    x = jax.random.normal(keys[0], (B, D_IN), dtype=jnp.float32)

    # Deterministic synthetic parameter init (shapes from the module __init__).
    w1 = jax.random.normal(keys[1], (D_IN, D_H1), jnp.float32) * 0.05
    b1 = jax.random.normal(keys[2], (1, D_H1), jnp.float32) * 0.05
    w2 = jax.random.normal(keys[3], (D_H1, D_H2), jnp.float32) * 0.05
    b2 = jax.random.normal(keys[4], (1, D_H2), jnp.float32) * 0.05
    w3 = jax.random.normal(keys[5], (D_H2, D_OUT), jnp.float32) * 0.05
    b3 = jax.random.normal(keys[6], (1, D_OUT), jnp.float32) * 0.05
    delta = jax.random.uniform(keys[7], (1,), jnp.float32)        # torch.rand(1)

    # Small tile here just to get a multi-step grid at this tiny B; production
    # default is tb=512 (sweep 256/512/1024).
    out = season_embedder(x, w1, b1, w2, b2, w3, b3, delta, tb=32)
    out = jax.block_until_ready(out)

    ref = reference(x, w1, b1, w2, b2, w3, b3, delta)
    assert out.shape == (B, D_OUT)
    assert jnp.allclose(out, ref, atol=1e-4, rtol=1e-4), (
        float(jnp.max(jnp.abs(out - ref))))

    print("KERNEL_OK")
</pallas_src>

<mosaic_0001>
module attributes {stable_mosaic.version = 11 : i64} {
  func.func @season_embedder_kernel(%arg0: i32, %arg1: memref<32x512xf32, #tpu.memory_space<vmem>>, %arg2: memref<512x128xf32, #tpu.memory_space<vmem>>, %arg3: memref<1x128xf32, #tpu.memory_space<vmem>>, %arg4: memref<128x32xf32, #tpu.memory_space<vmem>>, %arg5: memref<1x32xf32, #tpu.memory_space<vmem>>, %arg6: memref<32x2xf32, #tpu.memory_space<vmem>>, %arg7: memref<1x2xf32, #tpu.memory_space<vmem>>, %arg8: memref<1xf32, #tpu.memory_space<smem>>, %arg9: memref<32x2xf32, #tpu.memory_space<vmem>>) attributes {dimension_semantics = [#tpu.dimension_semantics<parallel>], iteration_bounds = array<i64: 4>, scalar_prefetch = 0 : i64, scratch_operands = 0 : i64, tpu.core_type = #tpu.core_type<tc>, window_params = [{transform_indices = @transform_0, window_bounds = array<i64: 32, 512>}, {pipeline_mode = #tpu.pipeline_mode<synchronous>, transform_indices = @transform_1, window_bounds = array<i64: 512, 128>}, {pipeline_mode = #tpu.pipeline_mode<synchronous>, transform_indices = @transform_2, window_bounds = array<i64: 1, 128>}, {pipeline_mode = #tpu.pipeline_mode<synchronous>, transform_indices = @transform_3, window_bounds = array<i64: 128, 32>}, {pipeline_mode = #tpu.pipeline_mode<synchronous>, transform_indices = @transform_4, window_bounds = array<i64: 1, 32>}, {pipeline_mode = #tpu.pipeline_mode<synchronous>, transform_indices = @transform_5, window_bounds = array<i64: 32, 2>}, {pipeline_mode = #tpu.pipeline_mode<synchronous>, transform_indices = @transform_6, window_bounds = array<i64: 1, 2>}, {transform_indices = @transform_7, window_bounds = array<i64: 1>}, {transform_indices = @transform_8, window_bounds = array<i64: 32, 2>}]} {
    %c0 = arith.constant 0 : index
    %c0_0 = arith.constant 0 : index
    %0 = vector.load %arg1[%c0, %c0_0] : memref<32x512xf32, #tpu.memory_space<vmem>>, vector<32x512xf32>
    %c0_1 = arith.constant 0 : index
    %c0_2 = arith.constant 0 : index
    %1 = vector.load %arg2[%c0_1, %c0_2] : memref<512x128xf32, #tpu.memory_space<vmem>>, vector<512x128xf32>
    %cst = arith.constant dense<0.000000e+00> : vector<32x128xf32>
    %2 = tpu.matmul %0, %1, %cst {dimension_numbers = #tpu.dot_dimension_numbers<[1], [0], [0], [1], [0, 0, 1, 1], [], []>} : vector<32x512xf32>, vector<512x128xf32>, vector<32x128xf32> -> vector<32x128xf32>
    %c0_3 = arith.constant 0 : index
    %c0_4 = arith.constant 0 : index
    %3 = vector.load %arg3[%c0_3, %c0_4] : memref<1x128xf32, #tpu.memory_space<vmem>>, vector<1x128xf32>
    %4 = vector.broadcast %3 : vector<1x128xf32> to vector<32x128xf32>
    %5 = arith.addf %2, %4 : vector<32x128xf32>
    %cst_5 = arith.constant 0.000000e+00 : f32
    %6 = vector.broadcast %cst_5 : f32 to vector<32x128xf32>
    %7 = arith.maximumf %5, %6 : vector<32x128xf32>
    %c0_6 = arith.constant 0 : index
    %c0_7 = arith.constant 0 : index
    %8 = vector.load %arg4[%c0_6, %c0_7] : memref<128x32xf32, #tpu.memory_space<vmem>>, vector<128x32xf32>
    %cst_8 = arith.constant dense<0.000000e+00> : vector<32x32xf32>
    %9 = tpu.matmul %7, %8, %cst_8 {dimension_numbers = #tpu.dot_dimension_numbers<[1], [0], [0], [1], [0, 0, 1, 1], [], []>} : vector<32x128xf32>, vector<128x32xf32>, vector<32x32xf32> -> vector<32x32xf32>
    %c0_9 = arith.constant 0 : index
    %c0_10 = arith.constant 0 : index
    %10 = vector.load %arg5[%c0_9, %c0_10] : memref<1x32xf32, #tpu.memory_space<vmem>>, vector<1x32xf32>
    %11 = vector.broadcast %10 : vector<1x32xf32> to vector<32x32xf32>
    %12 = arith.addf %9, %11 : vector<32x32xf32>
    %cst_11 = arith.constant 0.000000e+00 : f32
    %13 = vector.broadcast %cst_11 : f32 to vector<32x32xf32>
    %14 = arith.maximumf %12, %13 : vector<32x32xf32>
    %c0_12 = arith.constant 0 : index
    %c0_13 = arith.constant 0 : index
    %15 = vector.load %arg6[%c0_12, %c0_13] : memref<32x2xf32, #tpu.memory_space<vmem>>, vector<32x2xf32>
    %cst_14 = arith.constant dense<0.000000e+00> : vector<32x2xf32>
    %16 = tpu.matmul %14, %15, %cst_14 {dimension_numbers = #tpu.dot_dimension_numbers<[1], [0], [0], [1], [0, 0, 1, 1], [], []>} : vector<32x32xf32>, vector<32x2xf32>, vector<32x2xf32> -> vector<32x2xf32>
    %c0_15 = arith.constant 0 : index
    %c0_16 = arith.constant 0 : index
    %17 = vector.load %arg7[%c0_15, %c0_16] : memref<1x2xf32, #tpu.memory_space<vmem>>, vector<1x2xf32>
    %18 = vector.broadcast %17 : vector<1x2xf32> to vector<32x2xf32>
    %19 = arith.addf %16, %18 : vector<32x2xf32>
    %20 = vector.extract_strided_slice %19 {offsets = [0, 0], sizes = [32, 1], strides = [1, 1]} : vector<32x2xf32> to vector<32x1xf32>
    %21 = vector.extract_strided_slice %19 {offsets = [0, 1], sizes = [32, 1], strides = [1, 1]} : vector<32x2xf32> to vector<32x1xf32>
    %22 = arith.mulf %20, %20 : vector<32x1xf32>
    %23 = arith.mulf %21, %21 : vector<32x1xf32>
    %24 = arith.addf %22, %23 : vector<32x1xf32>
    %c0_17 = arith.constant 0 : index
    %25 = memref.load %arg8[%c0_17] : memref<1xf32, #tpu.memory_space<smem>>
    %26 = math.rsqrt %24 : vector<32x1xf32>
    %27 = vector.broadcast %25 : f32 to vector<32x1xf32>
    %28 = arith.mulf %27, %26 : vector<32x1xf32>
    %cst_18 = arith.constant 1.000000e+00 : f32
    %29 = vector.broadcast %cst_18 : f32 to vector<32x1xf32>
    %30 = arith.addf %29, %28 : vector<32x1xf32>
    %31 = vector.broadcast %30 : vector<32x1xf32> to vector<32x2xf32>
    %32 = arith.mulf %19, %31 : vector<32x2xf32>
    %c0_19 = arith.constant 0 : index
    %c0_20 = arith.constant 0 : index
    %33 = vector.load %arg9[%c0_19, %c0_20] : memref<32x2xf32, #tpu.memory_space<vmem>>, vector<32x2xf32>
    tpu.vector_store %arg9[%c0_19, %c0_20], %32 {strides = array<i32>} : memref<32x2xf32, #tpu.memory_space<vmem>>, vector<32x2xf32>,
    return
  }
  func.func @transform_0(%arg0: i32) -> (i32, i32) {
    %c0_i32 = arith.constant 0 : i32
    %c0_i32_0 = arith.constant 0 : i32
    return %arg0, %c0_i32 : i32, i32
  }
  func.func @transform_1(%arg0: i32) -> (i32, i32) {
    %c0_i32 = arith.constant 0 : i32
    %c0_i32_0 = arith.constant 0 : i32
    %c0_i32_1 = arith.constant 0 : i32
    return %c0_i32, %c0_i32_0 : i32, i32
  }
  func.func @transform_2(%arg0: i32) -> (i32, i32) {
    %c0_i32 = arith.constant 0 : i32
    %c0_i32_0 = arith.constant 0 : i32
    %c0_i32_1 = arith.constant 0 : i32
    return %c0_i32, %c0_i32_0 : i32, i32
  }
  func.func @transform_3(%arg0: i32) -> (i32, i32) {
    %c0_i32 = arith.constant 0 : i32
    %c0_i32_0 = arith.constant 0 : i32
    %c0_i32_1 = arith.constant 0 : i32
    return %c0_i32, %c0_i32_0 : i32, i32
  }
  func.func @transform_4(%arg0: i32) -> (i32, i32) {
    %c0_i32 = arith.constant 0 : i32
    %c0_i32_0 = arith.constant 0 : i32
    %c0_i32_1 = arith.constant 0 : i32
    return %c0_i32, %c0_i32_0 : i32, i32
  }
  func.func @transform_5(%arg0: i32) -> (i32, i32) {
    %c0_i32 = arith.constant 0 : i32
    %c0_i32_0 = arith.constant 0 : i32
    %c0_i32_1 = arith.constant 0 : i32
    return %c0_i32, %c0_i32_0 : i32, i32
  }
  func.func @transform_6(%arg0: i32) -> (i32, i32) {
    %c0_i32 = arith.constant 0 : i32
    %c0_i32_0 = arith.constant 0 : i32
    %c0_i32_1 = arith.constant 0 : i32
    return %c0_i32, %c0_i32_0 : i32, i32
  }
  func.func @transform_7(%arg0: i32) -> i32 {
    %c0_i32 = arith.constant 0 : i32
    %c0_i32_0 = arith.constant 0 : i32
    return %c0_i32 : i32
  }
  func.func @transform_8(%arg0: i32) -> (i32, i32) {
    %c0_i32 = arith.constant 0 : i32
    %c0_i32_0 = arith.constant 0 : i32
    return %arg0, %c0_i32 : i32, i32
  }
}

</mosaic_0001>

<bundles_post_ra>
// kernel: tpu_custom_call.1
= control target key start
LH: loop header
LB: loop body
LE: loop exit
PB: predicated region body
PF: predicated region fallthrough
CT: control target
= control target key end

     0   :  { %s1720_s0 = inlined_call_operand.hbm [shape: f32[128,512], index: 0, kind: input, shape index: {}]   ;;  %s1721_s1 = inlined_call_operand.hbm [shape: f32[512,128], index: 1, kind: input, shape index: {}]   ;;  %s1722_s2 = inlined_call_operand.vmem [shape: f32[1,128], index: 2, kind: input, shape index: {}]   ;;  %s1723_s3 = inlined_call_operand.vmem [shape: f32[128,32], index: 3, kind: input, shape index: {}]   ;;  %s1724_s4 = inlined_call_operand.vmem [shape: f32[1,32], index: 4, kind: input, shape index: {}]   ;;  %s1725_s5 = inlined_call_operand.vmem [shape: f32[32,2], index: 5, kind: input, shape index: {}]   ;;  %s1726_s6 = inlined_call_operand.vmem [shape: f32[1,2], index: 6, kind: input, shape index: {}]   ;;  %s1727_s7 = inlined_call_operand.<no memory space> [shape: f32[1], index: 7, kind: input, shape index: {}]   ;;  %s1728_s8 = inlined_call_operand.vmem [shape: f32[128,2], index: 8, kind: output, shape index: {}]  }
   0x1   :  { %13 = sst [smem:[#allocation2]] %s1727_s7 }
   0x2   :  { %14 = vsyncpa [#allocation4], 0 }
   0x3   :  { %16 = vsyncpa [#allocation4 + $0x1], 0 }
   0x4   :  { %17 = vsyncpa [#allocation6], 0  ;;  %s1488_s29 = smov 0   ;;  %s1490_s30 = smov 0  }
   0x5   :  { %s1492_s9 = smov 0   ;;  %s1494_s10 = smov 0  }
   0x6 LB: > { %s971_s7 = sadd.s32 4294967295, %s1430_s10   ;;  %p43_p0 = scmp.ne.s32.totalorder %s1422_s30, %s1418_s29  ;;  %s1430_s10 = sphi %s1494_s10, %s1744_s10   ;;  %s1426_s9 = sphi %s1492_s9, %s1743_s9   ;;  %s1422_s30 = sphi %s1490_s30, %s1742_s30   ;;  %s1418_s29 = sphi %s1488_s29, %s1741_s29  }
   0x7   : > { %p1510_p1 = scmp.eq.s32.totalorder %s971_s7, 0  ;;  %p973_p2 = scmp.ge.s32.totalorder %s1430_s10, 1 }
   0x8   : > { %p227_p3 = scmp.lt.s32.totalorder %s1430_s10, 5  ;;  %s1432_s14 = smov [#allocation5]  }
   0x9   : > { %s1733_s11 = scalar_select %p1510_p1, 1, 0 }
   0xa   : > { %p1518_p4 = por %p1510_p1, %p43_p0  ;;  %p1522_p5 = pnand %p973_p2, %p227_p3 }
   0xb   : > { %s239_s15 = sshll.u32 %s1432_s14, 4  ;;  %s1535_s17 = sadd.s32 1, %s1430_s10   ;;  %s240_s15 = int_to_ptr.vmem [resolvable:$true] %s239_s15 }
   0xc   : > { %s1734_s12 = scalar_select %p1518_p4, 1, 0 }
   0xd   : > { %s1735_s13 = scalar_select %p1522_p5, 1, 0 }
   0xe   : > { %p1274_p6 = pneg %p1522_p5  ;;  %s30_s18 = sadd.s32 1, %s1426_s9 }
   0xf   : > { %s27_s19 = ssub.s32 %s1430_s10, %s1535_s17  ;;  %s1334_s22 = scalar_lea.hbm %s1721_s1, 8192 }
  0x10   : > { %p1530_p7 = pnand %p1274_p6, %p1510_p1  ;;  %p1335_p8 = scmp.ne.s32.totalorder %s1721_s1, %s1334_s22 }
  0x11   : > { %p1341_p12 = scmp.lt.u32.totalorder %s1334_s22, %s1721_s1 }
  0x12   : > { %p1336_p9 = pneg %p1530_p7 }
  0x14   : > { %p1337_p10 = pnand %p1336_p9, %p1335_p8 }
  0x16   : > { %p1338_p11 = pneg %p1337_p10 }
  0x18   : > { %p1343_p13 = pnand %p1341_p12, %p1338_p11 }
  0x1a   : > { %1346 = shalt.err (!%p1343_p13)
}
  0x1b   : > { %s1347_s27 = scalar_lea.vmem %s240_s15, 8192  ;;  %p1355_p6 = scmp.lt.s32.totalorder %s240_s15, %s240_s15 }
  0x1c   : > { %p1348_p0 = scmp.ne.s32.totalorder %s240_s15, %s1347_s27  ;;  %p1356_p1 = scmp.lt.s32.totalorder %s1347_s27, %s1347_s27 }
  0x1e   : > { %p1350_p2 = pnand %p1348_p0, %p1336_p9  ;;  %p1357_p4 = por %p1356_p1, %p1355_p6 }
  0x20   : > { %p1351_p3 = pneg %p1350_p2 }
  0x22   : > { %p1358_p5 = pnand %p1357_p4, %p1351_p3 }
  0x24   : > { %1361 = shalt.err (!%p1358_p5)
}
  0x25   : > { %s1433_s28 = smov 128   ;;  %s1434_s29 = smov 8  }
  0x26   : > { %1277 = dma.hbm_to_vmem [thread:$0]  (!%p1530_p7), %s1721_s1, 8192, %s240_s15, [#allocation6], %s1433_s28, %s1433_s28, %s1434_s29  }
  0x27   : > { %p28_p8 = scmp.eq.s32.totalorder %s27_s19, 0  ;;  %p37_p9 = scmp.ne.s32.totalorder %s1426_s9, %s1422_s30 }
  0x28   : > { %p38_p1 = scmp.eq.s32.totalorder %s1430_s10, 0  ;;  %p1283_p4 = scmp.lt.s32.totalorder %s1430_s10, 4 }
  0x29   : > { %s1561_s21 = scalar_select %p28_p8, %s1426_s9, %s30_s18  }
  0x2a   : > { %p39_p5 = por %p38_p1, %p37_p9  ;;  %s271_s22 = sand.u32 1, %s1426_s9  }
  0x2b   : > { %s976_s23 = sshll.u32 %s271_s22, 7  ;;  %s995_s24 = sshll.u32 %s1430_s10, 11 }
  0x2c   : > { %s1568_s27 = scalar_lea.hbm %s1720_s0, %s995_s24  ;;  %s275_s15 = scalar_lea.vmem [#allocation3], %s976_s23 }
  0x2d   : > { %s283_s16 = sshll.u32 %s275_s15, 4  ;;  %p1572_p7 = pnand %p1283_p4, %p39_p5  ;;  %s1570_s16 = int_to_ptr.vmem [resolvable:$true] %s283_s16 }
  0x2e   : > { %s1576_s19 = scalar_lea.sflag [#allocation4], %s271_s22  ;;  %s1362_s28 = scalar_lea.hbm %s1568_s27, 2048 }
  0x2f   : > { %p1363_p10 = scmp.ne.s32.totalorder %s1568_s27, %s1362_s28  ;;  %p1364_p11 = pneg %p1572_p7 }
  0x30   : > { %s1367_s20 = scalar_lea.hbm %s1720_s0, 8192  ;;  %p1368_p0 = scmp.lt.u32.totalorder %s1568_s27, %s1720_s0 }
  0x31   : > { %p1365_p12 = pnand %p1364_p11, %p1363_p10  ;;  %p1369_p2 = scmp.lt.u32.totalorder %s1367_s20, %s1362_s28 }
  0x32   : > { %p1371_p6 = scmp.lt.u32.totalorder %s1362_s28, %s1568_s27 }
  0x33   : > { %p1366_p13 = pneg %p1365_p12  ;;  %p1370_p3 = por %p1369_p2, %p1368_p0 }
  0x35   : > { %p1372_p8 = por %p1371_p6, %p1370_p3 }
  0x37   : > { %p1373_p9 = pnand %p1372_p8, %p1366_p13 }
  0x39   : > { %1376 = shalt.err (!%p1373_p9)
}
  0x3a   : > { %s1377_s22 = scalar_lea.vmem %s1570_s16, 2048  ;;  %s1435_s25 = smov [#allocation3]  }
  0x3b   : > { %p1378_p1 = scmp.ne.s32.totalorder %s1570_s16, %s1377_s22  ;;  %s1382_s26 = sshll.u32 %s1435_s25, 4  ;;  %s1383_s26 = int_to_ptr.vmem [resolvable:$false] %s1382_s26 }
  0x3c   : > { %s1384_s15 = scalar_lea.vmem %s1383_s26, 4096  ;;  %p1385_p10 = scmp.lt.s32.totalorder %s1570_s16, %s1383_s26 }
  0x3d   : > { %p1380_p4 = pnand %p1378_p1, %p1364_p11  ;;  %p1386_p12 = scmp.lt.s32.totalorder %s1384_s15, %s1377_s22 }
  0x3f   : > { %p1381_p5 = pneg %p1380_p4  ;;  %p1387_p0 = por %p1386_p12, %p1385_p10 }
  0x41   : > { %p1388_p2 = pnand %p1387_p0, %p1381_p5 }
  0x43   : > { %1391 = shalt.err (!%p1388_p2)
}
  0x44   : > { %s1436_s28 = smov 512   ;;  %s1437_s29 = smov 32  }
  0x45   : > { %1281 = dma.hbm_to_vmem [thread:$0]  (!%p1572_p7), %s1568_s27, 2048, %s1570_s16, %s1576_s19, %s1436_s28, %s1436_s28, %s1437_s29  }
  0x46   : > { %p1738_p11 = scmp.ne.s32.totalorder %s1735_s13, 0 }
  0x47   : > { %s297_s14 = sand.u32 (!%p1738_p11), 1, %s1422_s30   ;;  %p1739_p13 = scmp.ne.s32.totalorder (!%p1738_p11), %s1734_s12, 0 }
  0x48   : > { %295 = sbr.rel (%p1738_p11) target bundleno = 1053 (0x41d), region = 52  ;;  %s981_s20 = sshll.u32 (!%p1738_p11), %s297_s14, 7 }
  0x49   : > { %s298_s23 = scalar_lea.sflag (!%p1738_p11), [#allocation4], %s297_s14  ;;  %s1607_s24 = scalar_lea.vmem (!%p1738_p11), [#allocation3], %s981_s20 }
  0x4f   : > { %1409 = dma.done.wait (%p1739_p13), %s298_s23, 2048  }
  0x50   : > { %1411 = vsyncadd (%p1739_p13), %s298_s23, 4294965248  ;;  %p1740_p3 = scmp.ne.s32.totalorder %s1733_s11, 0 }
  0x52   : > { %1413 = dma.done.wait (%p1740_p3), [#allocation6], 8192  }
  0x53   : > { %1415 = vsyncadd (%p1740_p3), [#allocation6], 4294959104  ;;  %v377_v0 = vld [vmem:[#allocation5 + $0x80] sm:$0xff]  ;;  %v378_v1 = vld [vmem:[#allocation5 + $0x88] sm:$0xff]  ;;  %vm729_vm0 = vcmask 261120   ;;  %s1438_s29 = smov 127  }
  0x54   : > { %v361_v2 = vld [vmem:[#allocation5] sm:$0xff]  ;;  %v1164_v3 = vpack.c.bf16 %v378_v1, %v377_v0  ;;  %v362_v4 = vld [vmem:[#allocation5 + $0x8] sm:$0xff]  ;;  %v379_v11 = vld [vmem:[#allocation5 + $0x90] sm:$0xff]  ;;  %s851_s14 = sld [smem:[#allocation2]]  ;;  %s983_s20 = sshll.u32 %s971_s7, 2  ;;  %vm889_vm1 = vcmask 15360  }
  0x55   : > { %v409_v5 = vld [vmem:[#allocation5 + $0x180] sm:$0xff]  ;;  %v410_v6 = vld [vmem:[#allocation5 + $0x188] sm:$0xff]  ;;  %v1166_v7 = vpack.c.bf16 %v362_v4, %v361_v2  ;;  %v380_v13 = vld [vmem:[#allocation5 + $0x98] sm:$0xff]  ;;  %p340_p7 = scmp.lt.s32.totalorder %s983_s20, 15 }
  0x56   : > { %v1196_v8 = vpack.c.bf16 %v410_v6, %v409_v5  ;;  %v393_v9 = vld [vmem:[#allocation5 + $0x100] sm:$0xff]  ;;  %v394_v10 = vld [vmem:[#allocation5 + $0x108] sm:$0xff]  ;;  %1165 = vmatprep.subr.bf16.mxu0 %v1164_v3  ;;  %v363_v14 = vld [vmem:[#allocation5 + $0x10] sm:$0xff]  ;;  %v1168_v16 = vpack.c.bf16 %v380_v13, %v379_v11 }
  0x57   : > { %v1198_v12 = vpack.c.bf16 %v394_v10, %v393_v9  ;;  %v364_v15 = vld [vmem:[#allocation5 + $0x18] sm:$0xff]  ;;  %1167 = vmatpush3.bf16.msra.mxu0 %v1166_v7  ;;  %v411_v18 = vld [vmem:[#allocation5 + $0x190] sm:$0xff]  ;;  %v381_v23 = vld [vmem:[#allocation5 + $0xa0] sm:$0xff]  ;;  %s1746_s20 = smov (!%p340_p7, %s983_s20), 15 }
  0x58   : > { %1197 = vmatprep.subr.bf16.mxu1 %v1196_v8  ;;  %v1170_v17 = vpack.c.bf16 %v364_v15, %v363_v14  ;;  %v412_v19 = vld [vmem:[#allocation5 + $0x198] sm:$0xff]  ;;  %v395_v20 = vld [vmem:[#allocation5 + $0x110] sm:$0xff]  ;;  %v382_v24 = vld [vmem:[#allocation5 + $0xa8] sm:$0xff]  ;;  %1169 = vmatprep.subr.bf16.mxu0 %v1168_v16  ;;  %s984_s23 = sshll.u32 %s1746_s20, 3 }
  0x59   : > { %1199 = vmatpush3.bf16.msra.mxu1 %v1198_v12  ;;  %v1200_v21 = vpack.c.bf16 %v412_v19, %v411_v18  ;;  %v396_v22 = vld [vmem:[#allocation5 + $0x118] sm:$0xff]  ;;  %v1172_v26 = vpack.c.bf16 %v382_v24, %v381_v23  ;;  %v365_v27 = vld [vmem:[#allocation5 + $0x20] sm:$0xff]  ;;  %v366_v28 = vld [vmem:[#allocation5 + $0x28] sm:$0xff]  ;;  %s343_s13 = scalar_lea.vmem %s1728_s8, %s984_s23 }
  0x5a   : > { %v1202_v25 = vpack.c.bf16 %v396_v22, %v395_v20  ;;  %v413_v29 = vld [vmem:[#allocation5 + $0x1a0] sm:$0xff]  ;;  %v414_v30 = vld [vmem:[#allocation5 + $0x1a8] sm:$0xff]  ;;  %v1174_v33 = vpack.c.bf16 %v366_v28, %v365_v27  ;;  %v383_v35 = vld [vmem:[#allocation5 + $0xb0] sm:$0xff] }
  0x5b   : > { %1201 = vmatprep.subr.bf16.mxu1 %v1200_v21  ;;  %v397_v31 = vld [vmem:[#allocation5 + $0x120] sm:$0xff]  ;;  %v398_v32 = vld [vmem:[#allocation5 + $0x128] sm:$0xff]  ;;  %1171 = vmatpush3.bf16.msra.mxu0 %v1170_v17  ;;  %v1204_v34 = vpack.c.bf16 %v414_v30, %v413_v29  ;;  %v384_v36 = vld [vmem:[#allocation5 + $0xb8] sm:$0xff] }
  0x5c   : > { %v367_v37 = vld [vmem:[#allocation5 + $0x30] sm:$0xff]  ;;  %1173 = vmatprep.subr.bf16.mxu0 %v1172_v26  ;;  %v1206_v38 = vpack.c.bf16 %v398_v32, %v397_v31  ;;  %v1176_v39 = vpack.c.bf16 %v384_v36, %v383_v35  ;;  %v368_v40 = vld [vmem:[#allocation5 + $0x38] sm:$0xff]  ;;  %v385_v46 = vld [vmem:[#allocation5 + $0xc0] sm:$0xff] }
  0x5d   : > { %1203 = vmatpush3.bf16.msra.mxu1 %v1202_v25  ;;  %v415_v41 = vld [vmem:[#allocation5 + $0x1b0] sm:$0xff]  ;;  %v416_v42 = vld [vmem:[#allocation5 + $0x1b8] sm:$0xff]  ;;  %v386_v47 = vld [vmem:[#allocation5 + $0xc8] sm:$0xff]  ;;  %v1178_v48 = vpack.c.bf16 %v368_v40, %v367_v37 }
  0x5e   : > { %1205 = vmatprep.subr.bf16.mxu1 %v1204_v34  ;;  %v1208_v43 = vpack.c.bf16 %v416_v42, %v415_v41  ;;  %v399_v44 = vld [vmem:[#allocation5 + $0x130] sm:$0xff]  ;;  %v400_v45 = vld [vmem:[#allocation5 + $0x138] sm:$0xff]  ;;  %v417_v49 = vld [vmem:[#allocation5 + $0x1c0] sm:$0xff]  ;;  %v1180_v52 = vpack.c.bf16 %v386_v47, %v385_v46 }
  0x5f   : > { %1175 = vmatpush3.bf16.msra.mxu0 %v1174_v33  ;;  %v418_v50 = vld [vmem:[#allocation5 + $0x1c8] sm:$0xff]  ;;  %v1210_v51 = vpack.c.bf16 %v400_v45, %v399_v44  ;;  %v369_v53 = vld [vmem:[#allocation5 + $0x40] sm:$0xff]  ;;  %v387_v58 = vld [vmem:[#allocation5 + $0xd0] sm:$0xff] }
  0x60   : > { %1177 = vmatprep.subr.bf16.mxu0 %v1176_v39  ;;  %v370_v54 = vld [vmem:[#allocation5 + $0x48] sm:$0xff]  ;;  %v401_v55 = vld [vmem:[#allocation5 + $0x140] sm:$0xff]  ;;  %v1212_v56 = vpack.c.bf16 %v418_v50, %v417_v49  ;;  %v388_v59 = vld [vmem:[#allocation5 + $0xd8] sm:$0xff] }
  0x61   : > { %1207 = vmatpush3.bf16.msra.mxu1 %v1206_v38  ;;  %v402_v57 = vld [vmem:[#allocation5 + $0x148] sm:$0xff]  ;;  %v419_v60 = vld [vmem:[#allocation5 + $0x1d0] sm:$0xff]  ;;  %v420_v61 = vld [vmem:[#allocation5 + $0x1d8] sm:$0xff]  ;;  %v1182_v62 = vpack.c.bf16 %v370_v54, %v369_v53  ;;  %v1184_v0 = vpack.c.bf16 %v388_v59, %v387_v58 }
  0x62   : > { %1209 = vmatprep.subr.bf16.mxu1 %v1208_v43  ;;  %v1214_v63 = vpack.c.bf16 %v402_v57, %v401_v55  ;;  %v371_v1 = vld [vmem:[#allocation5 + $0x50] sm:$0xff]  ;;  %v372_v2 = vld [vmem:[#allocation5 + $0x58] sm:$0xff]  ;;  %v1216_v4 = vpack.c.bf16 %v420_v61, %v419_v60  ;;  %v389_v6 = vld [vmem:[#allocation5 + $0xe0] sm:$0xff] }
  0x63   : > { %1179 = vmatpush3.bf16.msra.mxu0 %v1178_v48  ;;  %v403_v3 = vld [vmem:[#allocation5 + $0x150] sm:$0xff]  ;;  %v404_v5 = vld [vmem:[#allocation5 + $0x158] sm:$0xff]  ;;  %v390_v7 = vld [vmem:[#allocation5 + $0xe8] sm:$0xff]  ;;  %v1186_v10 = vpack.c.bf16 %v372_v2, %v371_v1 }
  0x64   : > { %1181 = vmatprep.subr.bf16.mxu0 %v1180_v52  ;;  %v421_v8 = vld [vmem:[#allocation5 + $0x1e0] sm:$0xff]  ;;  %v422_v9 = vld [vmem:[#allocation5 + $0x1e8] sm:$0xff]  ;;  %v1218_v13 = vpack.c.bf16 %v404_v5, %v403_v3  ;;  %v1188_v14 = vpack.c.bf16 %v390_v7, %v389_v6  ;;  %v391_v19 = vld [vmem:[#allocation5 + $0xf0] sm:$0xff] }
  0x65   : > { %1211 = vmatpush3.bf16.msra.mxu1 %v1210_v51  ;;  %v373_v11 = vld [vmem:[#allocation5 + $0x60] sm:$0xff]  ;;  %v374_v12 = vld [vmem:[#allocation5 + $0x68] sm:$0xff]  ;;  %v1220_v18 = vpack.c.bf16 %v422_v9, %v421_v8  ;;  %v392_v20 = vld [vmem:[#allocation5 + $0xf8] sm:$0xff] }
  0x66   : > { %1213 = vmatprep.subr.bf16.mxu1 %v1212_v56  ;;  %v405_v15 = vld [vmem:[#allocation5 + $0x160] sm:$0xff]  ;;  %v406_v16 = vld [vmem:[#allocation5 + $0x168] sm:$0xff]  ;;  %v348_v21 = vld [vmem:[%s1607_s24 + $0x18] sm:$0xff]  ;;  %v1190_v24 = vpack.c.bf16 %v374_v12, %v373_v11  ;;  %v1192_v26 = vpack.c.bf16 %v392_v20, %v391_v19 }
  0x67   : > { %1183 = vmatpush3.bf16.msra.mxu0 %v1182_v62  ;;  %v346_v17 = vld [vmem:[%s1607_s24 + $0x8] sm:$0xff]  ;;  %v423_v22 = vld [vmem:[#allocation5 + $0x1f0] sm:$0xff]  ;;  %v424_v23 = vld [vmem:[#allocation5 + $0x1f8] sm:$0xff]  ;;  %581 = vmatprep.mubr.f32.mxu1 %v348_v21  ;;  %v1222_v25 = vpack.c.bf16 %v406_v16, %v405_v15 }
  0x68   : > { %1185 = vmatprep.subr.bf16.mxu0 %v1184_v0  ;;  %496 = vmatprep.mubr.f32.mxu0 %v346_v17  ;;  %v375_v27 = vld [vmem:[#allocation5 + $0x70] sm:$0xff]  ;;  %v376_v28 = vld [vmem:[#allocation5 + $0x78] sm:$0xff]  ;;  %v1224_v29 = vpack.c.bf16 %v424_v23, %v423_v22  ;;  %v606_v32 = vld [vmem:[%s1723_s3] sm:$0xff] }
  0x69   : > { %1215 = vmatpush3.bf16.msra.mxu1 %v1214_v63  ;;  %v407_v30 = vld [vmem:[#allocation5 + $0x170] sm:$0xff]  ;;  %v408_v31 = vld [vmem:[#allocation5 + $0x178] sm:$0xff]  ;;  %v607_v33 = vld [vmem:[%s1723_s3 + $0x8] sm:$0xff]  ;;  %v1194_v34 = vpack.c.bf16 %v376_v28, %v375_v27 }
  0x6a   : > { %1217 = vmatprep.subr.bf16.mxu1 %v1216_v4  ;;  %v1226_v35 = vpack.c.bf16 %v408_v31, %v407_v30  ;;  %v1228_v36 = vpack.c.bf16 %v607_v33, %v606_v32  ;;  %v608_v37 = vld [vmem:[%s1723_s3 + $0x10] sm:$0xff]  ;;  %v609_v38 = vld [vmem:[%s1723_s3 + $0x18] sm:$0xff]  ;;  %v345_v39 = vld [vmem:[%s1607_s24] sm:$0xff] }
  0x6b   : > { %1187 = vmatpush3.bf16.msra.mxu0 %v1186_v10  ;;  %v347_v40 = vld [vmem:[%s1607_s24 + $0x10] sm:$0xff]  ;;  %v350_v41 = vld [vmem:[%s1607_s24 + $0x28] sm:$0xff]  ;;  %v352_v42 = vld [vmem:[%s1607_s24 + $0x38] sm:$0xff]  ;;  %v1232_v43 = vpack.c.bf16 %v609_v38, %v608_v37 }
  0x6c   : > { %1189 = vmatprep.subr.bf16.mxu0 %v1188_v14  ;;  %v610_v44 = vld [vmem:[%s1723_s3 + $0x20] sm:$0xff]  ;;  %v611_v45 = vld [vmem:[%s1723_s3 + $0x28] sm:$0xff]  ;;  %v351_v47 = vld [vmem:[%s1607_s24 + $0x30] sm:$0xff] }
  0x6d   : > { %1219 = vmatpush3.bf16.msra.mxu1 %v1218_v13  ;;  %v349_v46 = vld [vmem:[%s1607_s24 + $0x20] sm:$0xff]  ;;  %v354_v48 = vld [vmem:[%s1607_s24 + $0x48] sm:$0xff]  ;;  %v356_v49 = vld [vmem:[%s1607_s24 + $0x58] sm:$0xff]  ;;  %v1236_v50 = vpack.c.bf16 %v611_v45, %v610_v44 }
  0x6e   : > { %1221 = vmatprep.subr.bf16.mxu1 %v1220_v18  ;;  %v612_v51 = vld [vmem:[%s1723_s3 + $0x30] sm:$0xff]  ;;  %v613_v52 = vld [vmem:[%s1723_s3 + $0x38] sm:$0xff]  ;;  %v353_v53 = vld [vmem:[%s1607_s24 + $0x40] sm:$0xff] }
  0x6f   : > { %1191 = vmatpush3.bf16.msra.mxu0 %v1190_v24  ;;  %v355_v54 = vld [vmem:[%s1607_s24 + $0x50] sm:$0xff]  ;;  %v358_v55 = vld [vmem:[%s1607_s24 + $0x68] sm:$0xff]  ;;  %v360_v56 = vld [vmem:[%s1607_s24 + $0x78] sm:$0xff]  ;;  %v1240_v57 = vpack.c.bf16 %v613_v52, %v612_v51 }
  0x70   : > { %1193 = vmatprep.subr.bf16.mxu0 %v1192_v26  ;;  %v614_v58 = vld [vmem:[%s1723_s3 + $0x40] sm:$0xff]  ;;  %v615_v59 = vld [vmem:[%s1723_s3 + $0x48] sm:$0xff]  ;;  %v359_v61 = vld [vmem:[%s1607_s24 + $0x70] sm:$0xff] }
  0x71   : > { %1223 = vmatpush3.bf16.msra.mxu1 %v1222_v25  ;;  %v357_v60 = vld [vmem:[%s1607_s24 + $0x60] sm:$0xff]  ;;  %v1244_v62 = vpack.c.bf16 %v615_v59, %v614_v58  ;;  %v616_v63 = vld [vmem:[%s1723_s3 + $0x50] sm:$0xff]  ;;  %v617_v0 = vld [vmem:[%s1723_s3 + $0x58] sm:$0xff] }
  0x72   : > { %1225 = vmatprep.subr.bf16.mxu1 %v1224_v29  ;;  %v1248_v1 = vpack.c.bf16 %v617_v0, %v616_v63  ;;  %v618_v2 = vld [vmem:[%s1723_s3 + $0x60] sm:$0xff]  ;;  %v619_v3 = vld [vmem:[%s1723_s3 + $0x68] sm:$0xff]  ;;  %v620_v5 = vld [vmem:[%s1723_s3 + $0x70] sm:$0xff] }
  0x73   : > { %1195 = vmatpush3.bf16.msra.mxu0 %v1194_v34  ;;  %v1252_v4 = vpack.c.bf16 %v619_v3, %v618_v2  ;;  %v621_v6 = vld [vmem:[%s1723_s3 + $0x78] sm:$0xff]  ;;  %v718_v8 = vld [vmem:[%s1725_s5] sm:$0xff]  ;;  %v719_v9 = vld [vmem:[%s1725_s5 + $0x8] sm:$0xff] }
  0x74   : > { %1229 = vmatprep.subr.bf16.mxu0 %v1228_v36  ;;  %v1256_v7 = vpack.c.bf16 %v621_v6, %v620_v5  ;;  %v1260_v10 = vpack.c.bf16 %v719_v9, %v718_v8  ;;  %v985_v12 = vld [vmem:[%s1722_s2] ss:$0 sm:$0xff]  ;;  %v1439_v8 = vmov 0  }
  0x75   : > { %1227 = vmatpush3.bf16.msra.mxu1 %v1226_v35  ;;  %v986_v51 = vld [vmem:[%s1724_s4] ss:$0 sm:$0xff]  ;;  %1325 = vset.pattern.permute.xlu0 %v1439_v8 }
  0x76   : > { %497 = vmatmul.mubr.f32.vlgmr.msra.gmra.mrb[0].mxu0 %v345_v39  ;;  %1261 = vmatprep.subr.bf16.mxu1 %v1260_v10  ;;  %v987_v0 = vld [vmem:[%s1726_s6] ss:$0 sm:$0xff] }
  0x77   : > { %501 = vmatprep.mubr.f32.mxu0 %v350_v41  ;;  %1231 = vmatpush3.bf16.msra.mxu0 %v1228_v36 }
  0x78   : > { %582 = vmatmul.mubr.f32.vlgmr.msra.gmra.mrb[0].mxu1 %v347_v40  ;;  %1233 = vmatprep.subr.bf16.mxu0 %v1232_v43 }
  0x79   : > { %586 = vmatprep.mubr.f32.mxu1 %v352_v42  ;;  %1263 = vmatpush3.bf16.msra.mxu1 %v1260_v10 }
  0x7a   : > { %502 = vmatmul.mubr.f32.gmra.mrb[2].mxu0 %v349_v46  ;;  %1324 = vset.pattern.permute.xlu1 %v1439_v8 }
  0x7b   : > { %506 = vmatprep.mubr.f32.mxu0 %v354_v48  ;;  %1235 = vmatpush3.bf16.msra.mxu0 %v1232_v43  ;;  %v720_v48 = vld [vmem:[%s1725_s5 + $0x10] sm:$0xff] }
  0x7c   : > { %587 = vmatmul.mubr.f32.gmra.mrb[2].mxu1 %v351_v47  ;;  %1237 = vmatprep.subr.bf16.mxu0 %v1236_v50 }
  0x7d   : > { %591 = vmatprep.mubr.f32.mxu1 %v356_v49  ;;  %v721_v49 = vld [vmem:[%s1725_s5 + $0x18] sm:$0xff] }
  0x7e   : > { %507 = vmatmul.mubr.f32.gmra.mrb[4].mxu0 %v353_v53 }
  0x7f   : > { %511 = vmatprep.mubr.f32.mxu0 %v358_v55  ;;  %1239 = vmatpush3.bf16.msra.mxu0 %v1236_v50  ;;  %v1264_v50 = vpack.c.bf16 %v721_v49, %v720_v48 }
  0x80   : > { %592 = vmatmul.mubr.f32.gmra.mrb[4].mxu1 %v355_v54  ;;  %1241 = vmatprep.subr.bf16.mxu0 %v1240_v57 }
  0x81   : > { %596 = vmatprep.mubr.f32.mxu1 %v360_v56  ;;  %1265 = vmatprep.subr.bf16.mxu1 %v1264_v50 }
  0x82   : > { %512 = vmatmul.mubr.f32.gmra.mrb[6].mxu0 %v357_v60  ;;  %1267 = vmatpush3.bf16.msra.mxu1 %v1264_v50 }
  0x83   : > { %1243 = vmatpush3.bf16.msra.mxu0 %v1240_v57 }
  0x84   : > { %597 = vmatmul.mubr.f32.gmra.mrb[6].mxu1 %v359_v61  ;;  %1245 = vmatprep.subr.bf16.mxu0 %v1244_v62 }
  0x87   : > { %1247 = vmatpush3.bf16.msra.mxu0 %v1244_v62 }
  0x88   : > { %1249 = vmatprep.subr.bf16.mxu0 %v1248_v1 }
  0x8b   : > { %1251 = vmatpush3.bf16.msra.mxu0 %v1248_v1 }
  0x8c   : > { %1253 = vmatprep.subr.bf16.mxu0 %v1252_v4 }
  0x8f   : > { %1255 = vmatpush3.bf16.msra.mxu0 %v1252_v4 }
  0x90   : > { %1257 = vmatprep.subr.bf16.mxu0 %v1256_v7 }
  0x93   : > { %1259 = vmatpush3.bf16.msra.mxu0 %v1256_v7 }
 0x149   : > { %v1028_v11 = vpop.f32.mrb[0].mxu0 }
 0x14a   : > { %v1029_v13 = vpop.f32.mrb[1].mxu0 }
 0x14b   : > { %v1072_v14 = vpop.f32.mrb[0].mxu1  ;;  %v1030_v15 = vadd.f32 %v1029_v13, %v1028_v11 }
 0x14c   : > { %v1073_v16 = vpop.f32.mrb[1].mxu1 }
 0x14d   : > { %v1074_v17 = vadd.f32 %v1073_v16, %v1072_v14  ;;  %v499_v18 = vadd.f32 %v1030_v15, %v985_v12  ;;  %v1031_v19 = vpop.f32.mrb[2].mxu0 }
 0x14e   : > { %v1032_v20 = vpop.f32.mrb[3].mxu0 }
 0x14f   : > { %v1075_v21 = vpop.f32.mrb[2].mxu1  ;;  %v584_v22 = vadd.f32 %v1074_v17, %v499_v18  ;;  %v1033_v23 = vadd.f32 %v1032_v20, %v1031_v19  ;;  %v856_v20 = vstv %s851_s14 }
 0x150   : > { %v1076_v24 = vpop.f32.mrb[3].mxu1 }
 0x151   : > { %v1077_v25 = vadd.f32 %v1076_v24, %v1075_v21  ;;  %v602_v26 = vmax.f32 %v584_v22, 0.0  ;;  %v504_v27 = vadd.f32 %v1033_v23, %v985_v12  ;;  %v1034_v28 = vpop.f32.mrb[4].mxu0 }
 0x152   : > { %v1035_v29 = vpop.f32.mrb[5].mxu0 }
 0x153   : > { %v1078_v30 = vpop.f32.mrb[4].mxu1  ;;  %v589_v31 = vadd.f32 %v1077_v25, %v504_v27  ;;  %v1036_v32 = vadd.f32 %v1035_v29, %v1034_v28  ;;  %1144 = vmatprep.mubr.f32.mxu0 %v602_v26 }
 0x154   : > { %v1079_v33 = vpop.f32.mrb[5].mxu1 }
 0x155   : > { %v1080_v34 = vadd.f32 %v1079_v33, %v1078_v30  ;;  %v603_v35 = vmax.f32 %v589_v31, 0.0  ;;  %v509_v36 = vadd.f32 %v1036_v32, %v985_v12  ;;  %v1037_v37 = vpop.f32.mrb[6].mxu0 }
 0x156   : > { %v1038_v38 = vpop.f32.mrb[7].mxu0 }
 0x157   : > { %v1081_v39 = vpop.f32.mrb[6].mxu1  ;;  %v594_v40 = vadd.f32 %v1080_v34, %v509_v36  ;;  %v1039_v41 = vadd.f32 %v1038_v38, %v1037_v37  ;;  %1145 = vmatmul.mubr.f32.vlgmr.msra.gmra.mrb[8].mxu0 %v603_v35 }
 0x158   : > { %v1082_v42 = vpop.f32.mrb[7].mxu1 }
 0x159   : > { %v1083_v43 = vadd.f32 %v1082_v42, %v1081_v39  ;;  %v604_v44 = vmax.f32 %v594_v40, 0.0  ;;  %v514_v45 = vadd.f32 %v1039_v41, %v985_v12 }
 0x15b   : > { %v599_v46 = vadd.f32 %v1083_v43, %v514_v45  ;;  %1147 = vmatprep.mubr.f32.mxu0 %v604_v44 }
 0x15d   : > { %v605_v47 = vmax.f32 %v599_v46, 0.0 }
 0x15f   : > { %1148 = vmatmul.mubr.f32.gmra.mrb[10].mxu0 %v605_v47 }
 0x22a   : > { %v1146_v52 = vpop.f32.mrb[8].mxu0 }
 0x22b   : > { %v701_v53 = vadd.f32 %v1146_v52, %v986_v51  ;;  %v695_v54 = vpop.f32.mrb[9].mxu0 }
 0x22c   : > { %v696_v55 = vadd.f32 %v986_v51, %v695_v54 }
 0x22d   : > { %v715_v57 = vmax.f32 %v701_v53, 0.0 }
 0x22e   : > { %v714_v56 = vmax.f32 %v696_v55, 0.0 }
 0x230   : > { %1158 = vmatprep.mubr.msk.f32.mxu1 %vm729_vm0, %v714_v56 }
 0x231   : > { %1159 = vmatmul.mubr.msk.f32.vlgmr.msra.gmra.mrb[8].mxu1 %vm729_vm0, %v715_v57 }
 0x232   : > { %v1149_v58 = vpop.f32.mrb[10].mxu0 }
 0x233   : > { %v711_v59 = vadd.f32 %v1149_v58, %v986_v51  ;;  %v705_v60 = vpop.f32.mrb[11].mxu0 }
 0x234   : > { %v706_v61 = vadd.f32 %v986_v51, %v705_v60 }
 0x235   : > { %v717_v63 = vmax.f32 %v711_v59, 0.0 }
 0x236   : > { %v716_v62 = vmax.f32 %v706_v61, 0.0 }
 0x238   : > { %1161 = vmatprep.mubr.msk.f32.mxu1 %vm729_vm0, %v716_v62 }
 0x239   : > { %1162 = vmatmul.mubr.msk.f32.gmra.mrb[10].mxu1 %vm729_vm0, %v717_v63 }
 0x304   : > { %v1160_v1 = vpop.f32.mrb[8].mxu1 }
 0x305   : > { %v808_v2 = vpop.f32.mrb[9].mxu1  ;;  %v814_v4 = vadd.f32 %v1160_v1, %v987_v0 }
 0x306   : > { %v809_v3 = vadd.f32 %v987_v0, %v808_v2 }
 0x307   : > { %v828_v6 = vmul.f32 %v814_v4, %v814_v4 }
 0x308   : > { %v827_v5 = vmul.f32 %v809_v3, %v809_v3 }
 0x30a   : > { %835 = vrot.lane.b32.xlu0 %v827_v5, %s1438_s29 }
 0x30c   : > { %v1163_v7 = vpop.f32.mrb[10].mxu1 }
 0x30d   : > { %v818_v9 = vpop.f32.mrb[11].mxu1  ;;  %v824_v11 = vadd.f32 %v1163_v7, %v987_v0 }
 0x30e   : > { %v819_v10 = vadd.f32 %v987_v0, %v818_v9  ;;  %837 = vrot.lane.b32.xlu0 %v828_v6, %s1438_s29 }
 0x30f   : > { %v830_v13 = vmul.f32 %v824_v11, %v824_v11 }
 0x310   : > { %v829_v12 = vmul.f32 %v819_v10, %v819_v10 }
 0x312   : > { %839 = vrot.lane.b32.xlu1 %v829_v12, %s1438_s29 }
 0x316   : > { %841 = vrot.lane.b32.xlu1 %v830_v13, %s1438_s29 }
 0x37c   : > { %v836_v14 = vpop.permute.xlu0 %835 }
 0x37d   : > { %v847_v15 = vadd.f32 %v836_v14, %v827_v5 }
 0x37f   : > { %1326 = vrsqrt.f32 %v847_v15 }
 0x380   : > { %v838_v16 = vpop.permute.xlu0 %837 }
 0x381   : > { %v848_v17 = vadd.f32 %v838_v16, %v828_v6 }
 0x383   : > { %1328 = vrsqrt.f32 %v848_v17 }
 0x384   : > { %v840_v18 = vpop.permute.xlu1 %839 }
 0x385   : > { %v849_v19 = vadd.f32 %v840_v18, %v829_v12 }
 0x387   : > { %1330 = vrsqrt.f32 %v849_v19 }
 0x388   : > { %v842_v21 = vpop.permute.xlu1 %841 }
 0x389   : > { %v1327_v22 = vpop.eup %1326  ;;  %v850_v23 = vadd.f32 %v842_v21, %v830_v13 }
 0x38a   : > { %v857_v24 = vmul.f32 %v1327_v22, %v856_v20 }
 0x38b   : > { %1332 = vrsqrt.f32 %v850_v23 }
 0x38c   : > { %v861_v25 = vadd.f32 1.0, %v857_v24 }
 0x38d   : > { %v1329_v26 = vpop.eup %1328 }
 0x38e   : > { %867 = vperm.xlu0 %1325, %v861_v25   ;;  %v858_v27 = vmul.f32 %v1329_v26, %v856_v20 }
 0x390   : > { %v862_v28 = vadd.f32 1.0, %v858_v27 }
 0x391   : > { %v1331_v29 = vpop.eup %1330 }
 0x392   : > { %872 = vperm.xlu1 %1324, %v862_v28   ;;  %v859_v30 = vmul.f32 %v1331_v29, %v856_v20 }
 0x394   : > { %v863_v31 = vadd.f32 1.0, %v859_v30 }
 0x395   : > { %v1333_v32 = vpop.eup %1332 }
 0x396   : > { %877 = vperm.xlu1 %1324, %v863_v31   ;;  %v860_v33 = vmul.f32 %v1333_v32, %v856_v20 }
 0x398   : > { %v864_v34 = vadd.f32 1.0, %v860_v33 }
 0x39a   : > { %882 = vperm.xlu0 %1325, %v864_v34  }
 0x40d   : > { %v868_v35 = vpop.permute.xlu0 %867 }
 0x40e   : > { %v885_v36 = vmul.f32 %v868_v35, %v809_v3 }
 0x410   : > { %890 = vst.msk [vmem:[%s343_s13] sm:$0xff] %vm889_vm1, %v885_v36 }
 0x411   : > { %v873_v37 = vpop.permute.xlu1 %872 }
 0x412   : > { %v886_v38 = vmul.f32 %v873_v37, %v814_v4 }
 0x414   : > { %891 = vst.msk [vmem:[%s343_s13 + $0x8] sm:$0xff] %vm889_vm1, %v886_v38 }
 0x415   : > { %v878_v39 = vpop.permute.xlu1 %877 }
 0x416   : > { %v887_v40 = vmul.f32 %v878_v39, %v819_v10 }
 0x418   : > { %892 = vst.msk [vmem:[%s343_s13 + $0x10] sm:$0xff] %vm889_vm1, %v887_v40 }
 0x419   : > { %v883_v41 = vpop.permute.xlu0 %882 }
 0x41a   : > { %v888_v42 = vmul.f32 %v883_v41, %v824_v11 }
 0x41c   : > { %893 = vst.msk [vmem:[%s343_s13 + $0x18] sm:$0xff] %vm889_vm1, %v888_v42 }
 0x41d PF: > { %p20_p6 = scmp.ge.s32.totalorder %s1535_s17, 6   ;;  %s1741_s29 = smov %s1422_s30 }
 0x41e   : > { %s1742_s30 = smov %s1426_s9  ;;  %s1743_s9 = smov %s1561_s21 }
 0x41f   : > { %s1744_s10 = smov %s1535_s17  ;;  %22 = sbr.rel (!%p20_p6) target bundleno = 6 (0x6), region = 96 }
 0x426   :  { %916 = vsyncpa [#allocation4], 1 }
 0x427   :  { %918 = vsyncpa [#allocation4 + $0x1], 1 }
 0x428   :  { %919 = vsyncpa [#allocation6], 1 }

</bundles_post_ra>
